<compile_context>
chip_gen: v7x
topology: tpu7x:2x2x1
jax: 0.10.0
libtpu: 0.0.40
codegen_flags: <defaults>
</compile_context>

<pallas_src>
import functools

import numpy as np

import jax
import jax.numpy as jnp
from jax import lax
from jax.experimental import pallas as pl
from jax.experimental.pallas import tpu as pltpu


# Tap order matches the torch Conv2d weight flattened over (kh, kw):
# t = kh*3 + kw  <->  (dh, dw) = (kh-1, kw-1).
_TAPS = tuple((dh, dw) for dh in (-1, 0, 1) for dw in (-1, 0, 1))


@functools.lru_cache(maxsize=None)
def _roll_like_jnp() -> bool:
    """One-time probe of pltpu.roll's rotation direction on this backend."""

    def probe_kernel(x_ref, o_ref):
        o_ref[...] = pltpu.roll(x_ref[...], shift=1, axis=1)

    x = jnp.arange(128, dtype=jnp.float32).reshape(1, 128)
    y = pl.pallas_call(
        probe_kernel, out_shape=jax.ShapeDtypeStruct((1, 128), jnp.float32)
    )(x)
    # jnp.roll semantics: y[0] == x[-1] == 127.
    return bool(jax.device_get(y)[0, 0] == 127.0)


def _boundary_masks(H, W):
    """(9, 1, H*W) bf16 masks: 1 where tap t of pixel m stays inside the image."""
    M = H * W
    pos = np.arange(M)
    h, w = pos // W, pos % W
    masks = np.zeros((9, 1, M), np.float32)
    for t, (dh, dw) in enumerate(_TAPS):
        valid = (h + dh >= 0) & (h + dh < H) & (w + dw >= 0) & (w + dw < W)
        masks[t, 0] = valid
    return jnp.asarray(masks, dtype=jnp.bfloat16)


def _conv_w9(w_oihw):
    """Torch Conv2d weight (Cout, Cin, 3, 3) -> (9, Cout, Cin) bf16, tap-major."""
    cout, cin = w_oihw.shape[0], w_oihw.shape[1]
    return (jnp.transpose(w_oihw, (2, 3, 0, 1))
            .reshape(9, cout, cin).astype(jnp.bfloat16))


def _deconv_to_conv_w(w_iohw):
    """ConvTranspose2d(k=3, s=1, p=1) weight (Cin, Cout, 3, 3) -> equivalent
    Conv2d weight (Cout, Cin, 3, 3): W_eq[o,i,kh,kw] = W_ct[i,o,2-kh,2-kw]."""
    return jnp.transpose(jnp.flip(w_iohw, axis=(2, 3)), (1, 0, 2, 3))


def _cdnet_kernel(x_ref, mask_ref,
                  w1, b1, w2, b2, w3, b3, w4, b4, w5, b5, wo, bo,
                  o_ref, *, H, W, roll_like_jnp):
    """Fused CDNet forward for one image: all activations stay in VMEM/vregs."""
    M = H * W

    def conv3x3_relu(act_f32, w_ref, b_ref):
        cout = w_ref.shape[1]
        act = act_f32.astype(jnp.bfloat16)              # bf16 MXU operand
        acc = jnp.zeros((cout, M), jnp.float32)
        for t, (dh, dw) in enumerate(_TAPS):
            s = dh * W + dw                              # flat-index offset of tap t
            if s == 0:
                tap = act                                # center tap: always in-bounds
            else:
                amount = (-s) % M if roll_like_jnp else s % M
                tap = pltpu.roll(act, shift=amount, axis=1)
                tap = tap * mask_ref[t]                  # zero wrapped / padded pixels
            acc = acc + jnp.dot(w_ref[t], tap,
                                preferred_element_type=jnp.float32)
        return jnp.maximum(acc + b_ref[...], 0.0)        # bias + ReLU in f32

    a = x_ref[...]
    a = conv3x3_relu(a, w1, b1)   # conv1  : 3  -> 32
    a = conv3x3_relu(a, w2, b2)   # conv2  : 32 -> 64
    a = conv3x3_relu(a, w3, b3)   # dconv1 : 64 -> 32
    a = conv3x3_relu(a, w4, b4)   # dconv2 : 32 -> 64
    a = conv3x3_relu(a, w5, b5)   # dconv3 : 64 -> 32
    # Fused 1x1 output conv (ConvTranspose k=1 == per-pixel channel matmul).
    out = jnp.dot(wo[...], a.astype(jnp.bfloat16),
                  preferred_element_type=jnp.float32) + bo[...]
    o_ref[...] = out.astype(o_ref.dtype)


def cdnet_forward(x, params):
    return _cdnet_forward_impl(x, params, _roll_like_jnp())


@functools.partial(jax.jit, static_argnums=(2,))
def _cdnet_forward_impl(x, p, roll_like_jnp):
    N, cin, H, W = x.shape
    M = H * W

    w1 = _conv_w9(p["conv1_w"])
    w2 = _conv_w9(p["conv2_w"])
    w3 = _conv_w9(_deconv_to_conv_w(p["dconv1_w"]))
    w4 = _conv_w9(_deconv_to_conv_w(p["dconv2_w"]))
    w5 = _conv_w9(_deconv_to_conv_w(p["dconv3_w"]))
    wo = jnp.transpose(p["out_w"][:, :, 0, 0]).astype(jnp.bfloat16)   # (3, 32)
    b1 = p["conv1_b"].reshape(-1, 1)
    b2 = p["conv2_b"].reshape(-1, 1)
    b3 = p["dconv1_b"].reshape(-1, 1)
    b4 = p["dconv2_b"].reshape(-1, 1)
    b5 = p["dconv3_b"].reshape(-1, 1)
    bo = p["out_b"].reshape(-1, 1)
    masks = _boundary_masks(H, W)
    cout = wo.shape[0]

    def resident(a):  # whole array, same VMEM block every grid step
        if a.ndim == 2:
            return pl.BlockSpec(a.shape, lambda n: (0, 0))
        return pl.BlockSpec(a.shape, lambda n: (0, 0, 0))

    kernel = functools.partial(_cdnet_kernel, H=H, W=W,
                               roll_like_jnp=roll_like_jnp)
    consts = (masks, w1, b1, w2, b2, w3, b3, w4, b4, w5, b5, wo, bo)

    out = pl.pallas_call(
        kernel,
        out_shape=jax.ShapeDtypeStruct((N, cout, M), jnp.float32),
        grid_spec=pltpu.PrefetchScalarGridSpec(
            num_scalar_prefetch=0,
            grid=(N,),
            in_specs=[pl.BlockSpec((None, cin, M), lambda n: (n, 0, 0))]
                     + [resident(c) for c in consts],
            out_specs=pl.BlockSpec((None, cout, M), lambda n: (n, 0, 0)),
        ),
        compiler_params=pltpu.CompilerParams(
            dimension_semantics=("parallel",)),
    )(x.reshape(N, cin, M), *consts)
    return out.reshape(N, cout, H, W)


# ---------------- pure-JAX reference (XLA convs, f32 HIGHEST) ----------------
def cdnet_reference(x, p):
    prec = lax.Precision.HIGHEST

    def conv(inp, w, bias, relu):
        y = lax.conv_general_dilated(
            inp, w, window_strides=(1, 1), padding=((1, 1), (1, 1)),
            dimension_numbers=("NCHW", "OIHW", "NCHW"), precision=prec)
        y = y + bias[None, :, None, None]
        return jnp.maximum(y, 0.0) if relu else y

    x1 = conv(x,  p["conv1_w"], p["conv1_b"], True)
    x2 = conv(x1, p["conv2_w"], p["conv2_b"], True)
    x3 = conv(x2, _deconv_to_conv_w(p["dconv1_w"]), p["dconv1_b"], True)
    x4 = conv(x3, _deconv_to_conv_w(p["dconv2_w"]), p["dconv2_b"], True)
    x5 = conv(x4, _deconv_to_conv_w(p["dconv3_w"]), p["dconv3_b"], True)
    w_out = jnp.transpose(p["out_w"][:, :, 0, 0])
    return (jnp.einsum("oi,nihw->nohw", w_out, x5, precision=prec)
            + p["out_b"][None, :, None, None])


def _init_params(key):
    ks = jax.random.split(key, 12)

    def w(k, shape, fan_in):
        return jax.random.normal(k, shape, jnp.float32) * (0.5 / jnp.sqrt(fan_in))

    def b(k, n):
        return jax.random.normal(k, (n,), jnp.float32) * 0.1

    return {
        # torch layouts: Conv2d (Cout, Cin, 3, 3); ConvTranspose2d (Cin, Cout, 3, 3)
        "conv1_w": w(ks[0], (32, 3, 3, 3), 3 * 9),    "conv1_b": b(ks[1], 32),
        "conv2_w": w(ks[2], (64, 32, 3, 3), 32 * 9),  "conv2_b": b(ks[3], 64),
        "dconv1_w": w(ks[4], (64, 32, 3, 3), 64 * 9), "dconv1_b": b(ks[5], 32),
        "dconv2_w": w(ks[6], (32, 64, 3, 3), 32 * 9), "dconv2_b": b(ks[7], 64),
        "dconv3_w": w(ks[8], (64, 32, 3, 3), 64 * 9), "dconv3_b": b(ks[9], 32),
        "out_w":   w(ks[10], (32, 3, 1, 1), 32),      "out_b":   b(ks[11], 3),
    }


if __name__ == "__main__":
    key = jax.random.PRNGKey(0)
    k_x, k_p = jax.random.split(key)

    N, C, H, W = 2, 3, 16, 16
    x = jax.random.normal(k_x, (N, C, H, W), dtype=jnp.float32)
    params = _init_params(k_p)

    out = jax.block_until_ready(cdnet_forward(x, params))
    assert out.shape == (N, 3, H, W), out.shape

    ref = cdnet_reference(x, params)
    err = float(jnp.max(jnp.abs(out - ref)))
    # bf16 MXU operands (f32 accumulation) vs the f32 HIGHEST reference leave
    # ~1e-3-level rounding differences; real logic errors would be >> 1e-2.
    assert jnp.allclose(out, ref, atol=1e-2, rtol=1e-2), f"max abs err {err}"

    print("KERNEL_OK")
</pallas_src>

<mosaic_0001>
module attributes {stable_mosaic.version = 11 : i64} {
  func.func @probe_kernel(%arg0: memref<1x128xf32, #tpu.memory_space<vmem>>, %arg1: memref<1x128xf32, #tpu.memory_space<vmem>>) attributes {dimension_semantics = [], scalar_prefetch = 0 : i64, scratch_operands = 0 : i64, tpu.core_type = #tpu.core_type<tc>} {
    %c0 = arith.constant 0 : index
    %c0_0 = arith.constant 0 : index
    %0 = vector.load %arg0[%c0, %c0_0] : memref<1x128xf32, #tpu.memory_space<vmem>>, vector<1x128xf32>
    %c1_i32 = arith.constant 1 : i32
    %1 = tpu.dynamic_rotate %0 by %c1_i32 dim 1 : vector<1x128xf32>, i32 -> vector<1x128xf32>
    %c0_1 = arith.constant 0 : index
    %c0_2 = arith.constant 0 : index
    %2 = vector.load %arg1[%c0_1, %c0_2] : memref<1x128xf32, #tpu.memory_space<vmem>>, vector<1x128xf32>
    tpu.vector_store %arg1[%c0_1, %c0_2], %1 {strides = array<i32>} : memref<1x128xf32, #tpu.memory_space<vmem>>, vector<1x128xf32>,
    return
  }
}

</mosaic_0001>

<bundles_post_ra>
// kernel: tpu_custom_call.1
= control target key start
LH: loop header
LB: loop body
LE: loop exit
PB: predicated region body
PF: predicated region fallthrough
CT: control target
= control target key end

     0   :  { %6 = vsyncpa [#allocation3], 0  ;;  %s128_s0 = inlined_call_operand.hbm [shape: f32[1,128], index: 0, kind: input, shape index: {}]   ;;  %s129_s1 = inlined_call_operand.hbm [shape: f32[1,128], index: 1, kind: output, shape index: {}]  }
   0x1   :  { %7 = vsyncpa [#allocation4], 0  ;;  %s91_s6 = smov [#allocation2]   ;;  %s43_s10 = scalar_lea.hbm %s128_s0, 16 }
   0x2   :  { %s14_s7 = sshll.u32 %s91_s6, 4  ;;  %p44_p0 = scmp.ne.s32.totalorder %s128_s0, %s43_s10  ;;  %s15_s7 = int_to_ptr.vmem [resolvable:$true] %s14_s7 }
   0x3   :  { %p47_p1 = scmp.lt.u32.totalorder %s43_s10, %s128_s0 }
   0x5   :  { %p49_p2 = pnand %p47_p1, %p44_p0 }
   0x7   :  { %52 = shalt.err (!%p49_p2)
}
   0x8   :  { %s53_s15 = scalar_lea.vmem %s15_s7, 16  ;;  %s57_s16 = scalar_lea.vmem %s15_s7, 32 }
   0x9   :  { %p54_p3 = scmp.ne.s32.totalorder %s15_s7, %s53_s15  ;;  %p58_p4 = scmp.lt.s32.totalorder %s15_s7, %s15_s7 }
   0xa   :  { %p59_p5 = scmp.lt.s32.totalorder %s57_s16, %s53_s15 }
   0xc   :  { %p60_p6 = por %p59_p5, %p58_p4 }
   0xe   :  { %p61_p7 = pnand %p60_p6, %p54_p3 }
  0x10   :  { %64 = shalt.err (!%p61_p7)
}
  0x11   :  { %17 = dma.hbm_to_vmem [thread:$0]  %s128_s0, 16, %s15_s7, [#allocation3]  }
  0x12   :  { %87 = dma.done.wait [#allocation3], 16  }
  0x13   :  { %88 = vsyncadd [#allocation3], 4294967280  ;;  %v21_v0 = vld [vmem:[#allocation2] sm:$0x1]  ;;  %s92_s19 = smov 1   ;;  %s93_s20 = smov [#allocation5]  }
  0x14   :  { %22 = vrot.lane.b32.xlu0 %v21_v0, %s92_s19  ;;  %s31_s21 = sshll.u32 %s93_s20, 4  ;;  %s32_s21 = int_to_ptr.vmem [resolvable:$true] %s31_s21 }
  0x15   :  { %s65_s22 = scalar_lea.vmem %s32_s21, 16  ;;  %s69_s23 = scalar_lea.vmem %s32_s21, 32 }
  0x16   :  { %p66_p8 = scmp.ne.s32.totalorder %s32_s21, %s65_s22  ;;  %p70_p9 = scmp.lt.s32.totalorder %s32_s21, %s32_s21 }
  0x17   :  { %p71_p10 = scmp.lt.s32.totalorder %s69_s23, %s65_s22 }
  0x19   :  { %p72_p11 = por %p71_p10, %p70_p9 }
  0x1b   :  { %p73_p12 = pnand %p72_p11, %p66_p8 }
  0x86   :  { %v23_v1 = vpop.permute.xlu0 %22 }
  0x87   :  { %24 = vst [vmem:[#allocation5] sm:$0x1] %v23_v1 }
  0x88   :  { %76 = shalt.err (!%p73_p12)
}
  0x89   :  { %s77_s25 = scalar_lea.hbm %s129_s1, 16 }
  0x8a   :  { %p78_p13 = scmp.ne.s32.totalorder %s129_s1, %s77_s25  ;;  %p81_p0 = scmp.lt.u32.totalorder %s77_s25, %s129_s1 }
  0x8c   :  { %p83_p1 = pnand %p81_p0, %p78_p13 }
  0x8e   :  { %86 = shalt.err (!%p83_p1)
}
  0x8f   :  { %34 = dma.vmem_to_hbm [thread:$0]  %s32_s21, 16, %s129_s1, [#allocation4]  }
  0x90   :  { %89 = dma.done.wait [#allocation4], 16  }
  0x91   :  { %90 = vsyncadd [#allocation4], 4294967280 }
  0x92   :  { %38 = vsyncpa [#allocation3], 1 }
  0x93   :  { %39 = vsyncpa [#allocation4], 1 }

</bundles_post_ra>
